<compile_context>
chip_gen: v5e
topology: v5e:2x2
jax: 0.10.0
libtpu: 0.0.40
codegen_flags: <defaults>
</compile_context>

<pallas_src>
import functools

import jax
import jax.numpy as jnp
from jax import lax
from jax.experimental import pallas as pl
from jax.experimental.pallas import tpu as pltpu


def _round_up(x, m):
    return (x + m - 1) // m * m


def _maybe_buffered_spec(block_shape, index_map, buffer_count):
    """BlockSpec with pipeline_mode=pl.Buffered(n) when available/accepted."""
    if buffer_count is not None:
        buffered = getattr(pl, "Buffered", None)
        if buffered is not None:
            try:
                return pl.BlockSpec(block_shape, index_map,
                                    pipeline_mode=buffered(buffer_count))
            except Exception:  # older jax without the kwarg
                pass
    return pl.BlockSpec(block_shape, index_map)


def _invariant_spec(block_shape):
    # Grid-invariant operand: resident in VMEM, single-buffered (perf review).
    return _maybe_buffered_spec(block_shape,
                                lambda *_: (0,) * len(block_shape), 1)


def _row_spec(block_shape, buffer_count=None):
    # Row-tiled operand streamed over the node grid axis.
    return _maybe_buffered_spec(
        block_shape, lambda i: (i,) + (0,) * (len(block_shape) - 1),
        buffer_count)


# ----------------------------------------------------------------------------
# Pass 1: d = rsqrt(rowsum(A) + 1)   (the +1 is the self loop of tilde_A)
# ----------------------------------------------------------------------------
def _degree_kernel(a_ref, d_ref):
    deg = jnp.sum(a_ref[...].astype(jnp.float32), axis=1, keepdims=True) + 1.0
    d_ref[...] = lax.rsqrt(deg)


# ----------------------------------------------------------------------------
# Pass 1b (option 1): dX = d * X, computed once (not per row tile).
# ----------------------------------------------------------------------------
def _dx_kernel(d_ref, x_ref, dx_ref):
    dx_ref[...] = (d_ref[...] * x_ref[...].astype(jnp.float32)
                   ).astype(dx_ref.dtype)


# ----------------------------------------------------------------------------
# Pass 1b (option 2): XW = relu(X @ [W_L|W_H|W_I]) plus d-prescaled L/H slice,
# computed once (previously recomputed inside every grid step of the main pass).
# ----------------------------------------------------------------------------
def _xw_kernel(d_ref, x_ref, w_ref, xw_ref, dxw_ref, *, c_pad, mxu_dtype):
    xw = jnp.maximum(
        jnp.dot(x_ref[...].astype(mxu_dtype), w_ref[...].astype(mxu_dtype),
                preferred_element_type=jnp.float32), 0.0)
    xw_ref[...] = xw.astype(xw_ref.dtype)
    dxw_ref[...] = (d_ref[...] * xw[:, :2 * c_pad]).astype(dxw_ref.dtype)


# ----------------------------------------------------------------------------
# Shared gating / mixing epilogue (VPU + EUP; no tiny matmuls).
# ----------------------------------------------------------------------------
def _mix_and_store(h_l, h_h, h_i, tw_ref, wmix_ref, o_ref, inv_t):
    tw = tw_ref[...].astype(jnp.float32)           # (3, Cp), zero-padded
    g_l = jax.nn.sigmoid(jnp.sum(h_l * tw[0:1, :], -1, keepdims=True)) * inv_t
    g_h = jax.nn.sigmoid(jnp.sum(h_h * tw[1:2, :], -1, keepdims=True)) * inv_t
    g_i = jax.nn.sigmoid(jnp.sum(h_i * tw[2:3, :], -1, keepdims=True)) * inv_t
    # logits = [gL gH gI] @ W_Mix, expanded with SMEM scalars.
    l0 = g_l * wmix_ref[0, 0] + g_h * wmix_ref[1, 0] + g_i * wmix_ref[2, 0]
    l1 = g_l * wmix_ref[0, 1] + g_h * wmix_ref[1, 1] + g_i * wmix_ref[2, 1]
    l2 = g_l * wmix_ref[0, 2] + g_h * wmix_ref[1, 2] + g_i * wmix_ref[2, 2]
    m = jnp.maximum(jnp.maximum(l0, l1), l2)
    e0 = jnp.exp(l0 - m)
    e1 = jnp.exp(l1 - m)
    e2 = jnp.exp(l2 - m)
    inv_s = pl.reciprocal(e0 + e1 + e2, approx=True)
    h = (e0 * inv_s) * h_l + (e1 * inv_s) * h_h + (e2 * inv_s) * h_i
    o_ref[...] = jnp.maximum(h, 0.0).astype(o_ref.dtype)


# ----------------------------------------------------------------------------
# Pass 2 (option 1): rows(H_LP@X) = d*(A_rows@(dX)) + d^2*X_rows, etc.
# ----------------------------------------------------------------------------
def _gnn_kernel_opt1(d_ref, x_ref, a_ref, dx_ref, w_ref, tw_ref, wmix_ref,
                     o_ref, *, c_pad, inv_t, mxu_dtype):
    f32 = jnp.float32

    def mm(a, b):  # MXU matmul, f32 accumulation
        return jnp.dot(a.astype(mxu_dtype), b.astype(mxu_dtype),
                       preferred_element_type=f32)

    d = d_ref[...]                    # (tm, 1)  f32
    x = x_ref[...].astype(f32)        # (tm, Fp) row tile
    a = a_ref[...]                    # (tm, Np) adjacency row slab
    dx = dx_ref[...]                  # (Np, Fp) resident d*X

    lx = d * mm(a, dx) + (d * d) * x  # rows of H_LP @ X
    hx = x - lx                       # rows of H_HP @ X
    w_l = w_ref[:, 0 * c_pad:1 * c_pad]
    w_h = w_ref[:, 1 * c_pad:2 * c_pad]
    w_i = w_ref[:, 2 * c_pad:3 * c_pad]
    h_l = jnp.maximum(mm(lx, w_l), 0.0)
    h_h = jnp.maximum(mm(hx, w_h), 0.0)
    h_i = jnp.maximum(mm(x, w_i), 0.0)
    _mix_and_store(h_l, h_h, h_i, tw_ref, wmix_ref, o_ref, inv_t)


# ----------------------------------------------------------------------------
# Pass 2 (option 2): only A_rows @ (d*relu(XW)) + row terms; XW is hoisted.
# ----------------------------------------------------------------------------
def _gnn_kernel_opt2(d_ref, xw_ref, a_ref, dxw_ref, tw_ref, wmix_ref, o_ref,
                     *, c_pad, inv_t, mxu_dtype):
    f32 = jnp.float32

    def mm(a, b):
        return jnp.dot(a.astype(mxu_dtype), b.astype(mxu_dtype),
                       preferred_element_type=f32)

    d = d_ref[...]                        # (tm, 1)
    xw = xw_ref[...].astype(f32)          # (tm, 3*Cp) rows of relu(X@Wcat)
    a = a_ref[...]                        # (tm, Np)
    dxw = dxw_ref[...]                    # (Np, 2*Cp) resident d*relu(X@[WL|WH])

    axw = mm(a, dxw)                      # (tm, 2*Cp)
    x_l = xw[:, 0 * c_pad:1 * c_pad]
    x_h = xw[:, 1 * c_pad:2 * c_pad]
    x_i = xw[:, 2 * c_pad:3 * c_pad]
    l_l = d * axw[:, 0 * c_pad:1 * c_pad] + (d * d) * x_l   # H_LP @ relu(XW_L)
    l_h = d * axw[:, 1 * c_pad:2 * c_pad] + (d * d) * x_h   # H_LP @ relu(XW_H)
    _mix_and_store(l_l, x_h - l_h, x_i, tw_ref, wmix_ref, o_ref, inv_t)


# ----------------------------------------------------------------------------
# Wrapper: padding, tiling, the pallas_calls.
# ----------------------------------------------------------------------------
@functools.partial(
    jax.jit,
    static_argnames=("temperature", "option", "mxu_dtype", "tm",
                     "stream_buffers"))
def gnn_layer(X, A, params, d_inv_sqrt=None, *, temperature=1.0, option=1,
              mxu_dtype=jnp.bfloat16, tm=None, stream_buffers=None):
    if option not in (1, 2):
        raise ValueError("option must be 1 or 2")
    f32 = jnp.float32
    N, F_in = X.shape
    C_out = params["W_L"].shape[1]

    # Node tile: default 256 (fills v6e/v7x MXU) for large graphs; pass tm=128
    # on v5e, stream_buffers=3 there to deepen the A-slab pipeline.
    if tm is None:
        tm = _round_up(max(N, 8), 8) if N <= 256 else 256
    else:
        tm = _round_up(max(tm, 8), 8)
    Np = _round_up(N, tm)
    Fp = _round_up(F_in, 128)
    Cp = _round_up(C_out, 128)
    num_tiles = Np // tm
    ab = jnp.dtype(mxu_dtype).itemsize

    # A is 0/1 so the bf16 stream is exact; X / W in the MXU operand dtype.
    A_p = jnp.zeros((Np, Np), mxu_dtype).at[:N, :N].set(A.astype(mxu_dtype))
    X_p = jnp.zeros((Np, Fp), mxu_dtype).at[:N, :F_in].set(X.astype(mxu_dtype))

    def pad_w(w):
        return jnp.zeros((Fp, Cp), mxu_dtype).at[:F_in, :C_out].set(
            w.astype(mxu_dtype))

    W_cat = jnp.concatenate(
        [pad_w(params["W_L"]), pad_w(params["W_H"]), pad_w(params["W_I"])],
        axis=1)                                             # (Fp, 3*Cp)

    def pad_tw(w):
        return jnp.zeros((1, Cp), f32).at[0, :C_out].set(
            w.astype(f32).reshape(-1))

    TW = jnp.concatenate(
        [pad_tw(params["tilde_W_L"]), pad_tw(params["tilde_W_H"]),
         pad_tw(params["tilde_W_I"])], axis=0)              # (3, Cp)
    W_mix = params["W_Mix"].astype(f32)                     # (3, 3) -> SMEM

    par = ("parallel",)

    # --- pass 1: degree normalization (skippable: pass d_inv_sqrt to
    #     amortize this second read of A across stacked layers) --------------
    if d_inv_sqrt is None:
        d = pl.pallas_call(
            _degree_kernel,
            out_shape=jax.ShapeDtypeStruct((Np, 1), f32),
            grid=(num_tiles,),
            in_specs=[_row_spec((tm, Np))],
            out_specs=pl.BlockSpec((tm, 1), lambda i: (i, 0)),
            compiler_params=pltpu.CompilerParams(dimension_semantics=par),
        )(A_p)
    else:
        d = jnp.zeros((Np, 1), f32).at[:N, 0].set(
            d_inv_sqrt.astype(f32).reshape(-1))

    # --- pass 1b: hoisted prescales (computed once, not once per row tile) --
    if option == 1:
        dX = pl.pallas_call(
            _dx_kernel,
            out_shape=jax.ShapeDtypeStruct((Np, Fp), mxu_dtype),
            grid=(num_tiles,),
            in_specs=[_row_spec((tm, 1)), _row_spec((tm, Fp))],
            out_specs=pl.BlockSpec((tm, Fp), lambda i: (i, 0)),
            compiler_params=pltpu.CompilerParams(dimension_semantics=par),
        )(d, X_p)
    else:
        XW, dXW = pl.pallas_call(
            functools.partial(_xw_kernel, c_pad=Cp, mxu_dtype=mxu_dtype),
            out_shape=(jax.ShapeDtypeStruct((Np, 3 * Cp), mxu_dtype),
                       jax.ShapeDtypeStruct((Np, 2 * Cp), mxu_dtype)),
            grid=(num_tiles,),
            in_specs=[_row_spec((tm, 1)), _row_spec((tm, Fp)),
                      _invariant_spec((Fp, 3 * Cp))],
            out_specs=(pl.BlockSpec((tm, 3 * Cp), lambda i: (i, 0)),
                       pl.BlockSpec((tm, 2 * Cp), lambda i: (i, 0))),
            compiler_params=pltpu.CompilerParams(dimension_semantics=par),
        )(d, X_p, W_cat)

    # --- pass 2: fused GNN layer, row-tiled over nodes -----------------------
    inv_t = 1.0 / float(temperature)
    out_bytes = 4 * Np * Cp
    small_bytes = 4 * (Np + 3 * Cp + 9)
    if option == 1:
        flops = 2 * Np * Np * Fp + 3 * 2 * Np * Fp * Cp
        bytes_accessed = (ab * (Np * Np + 2 * Np * Fp + Fp * 3 * Cp)
                          + small_bytes + out_bytes)
        vmem_need = (2 * (tm * Np + tm * Fp) * ab + 2 * tm * 128 * 4
                     + (Np * Fp + Fp * 3 * Cp) * ab + 8 * Cp * 4
                     + 2 * tm * Cp * 4)
    else:
        flops = 2 * Np * Np * 2 * Cp
        bytes_accessed = (ab * (Np * Np + Np * 3 * Cp + Np * 2 * Cp)
                          + small_bytes + out_bytes)
        vmem_need = (2 * (tm * Np + tm * 3 * Cp) * ab + 2 * tm * 128 * 4
                     + Np * 2 * Cp * ab + 8 * Cp * 4
                     + 2 * tm * Cp * 4)
    cost = pl.CostEstimate(flops=int(flops), transcendentals=int(7 * Np),
                           bytes_accessed=int(bytes_accessed))
    vmem_limit = int(min(max(2 * vmem_need + (4 << 20), 32 << 20), 64 << 20))
    cparams = pltpu.CompilerParams(dimension_semantics=par,
                                   vmem_limit_bytes=vmem_limit)
    smem_spec = pl.BlockSpec(memory_space=pltpu.MemorySpace.SMEM)
    out_spec = pl.BlockSpec((tm, Cp), lambda i: (i, 0))

    if option == 1:
        kernel = functools.partial(_gnn_kernel_opt1, c_pad=Cp, inv_t=inv_t,
                                   mxu_dtype=mxu_dtype)
        out_p = pl.pallas_call(
            kernel,
            out_shape=jax.ShapeDtypeStruct((Np, Cp), f32),
            grid=(num_tiles,),
            in_specs=[
                _row_spec((tm, 1)),                      # d row tile
                _row_spec((tm, Fp)),                     # X row tile
                _row_spec((tm, Np), stream_buffers),     # A row slab
                _invariant_spec((Np, Fp)),               # d*X (resident)
                _invariant_spec((Fp, 3 * Cp)),           # [W_L|W_H|W_I]
                _invariant_spec((3, Cp)),                # [tW_L;tW_H;tW_I]
                smem_spec,                               # W_Mix scalars
            ],
            out_specs=out_spec,
            compiler_params=cparams,
            cost_estimate=cost,
        )(d, X_p, A_p, dX, W_cat, TW, W_mix)
    else:
        kernel = functools.partial(_gnn_kernel_opt2, c_pad=Cp, inv_t=inv_t,
                                   mxu_dtype=mxu_dtype)
        out_p = pl.pallas_call(
            kernel,
            out_shape=jax.ShapeDtypeStruct((Np, Cp), f32),
            grid=(num_tiles,),
            in_specs=[
                _row_spec((tm, 1)),                      # d row tile
                _row_spec((tm, 3 * Cp)),                 # relu(X@Wcat) rows
                _row_spec((tm, Np), stream_buffers),     # A row slab
                _invariant_spec((Np, 2 * Cp)),           # d*relu(X@[WL|WH])
                _invariant_spec((3, Cp)),                # [tW_L;tW_H;tW_I]
                smem_spec,                               # W_Mix scalars
            ],
            out_specs=out_spec,
            compiler_params=cparams,
            cost_estimate=cost,
        )(d, XW, A_p, dXW, TW, W_mix)

    return out_p[:N, :C_out]


# ----------------------------------------------------------------------------
# Pure-JAX reference mirroring the PyTorch forward (for verification).
# ----------------------------------------------------------------------------
def gnn_layer_ref(X, A, params, *, temperature=1.0, option=1):
    N = A.shape[0]
    eye = jnp.eye(N, dtype=jnp.float32)
    tilde_A = A + eye
    d_inv_sqrt = lax.rsqrt(jnp.sum(tilde_A, axis=1))
    Dm = jnp.diag(d_inv_sqrt)
    H_LP = Dm @ tilde_A @ Dm
    H_HP = eye - H_LP
    if option == 1:
        H_L = jax.nn.relu(H_LP @ X @ params["W_L"])
        H_H = jax.nn.relu(H_HP @ X @ params["W_H"])
        H_I = jax.nn.relu(X @ params["W_I"])
    else:
        H_L = H_LP @ jax.nn.relu(X @ params["W_L"])
        H_H = H_HP @ jax.nn.relu(X @ params["W_H"])
        H_I = jax.nn.relu(X @ params["W_I"])
    aL = jax.nn.sigmoid(H_L @ params["tilde_W_L"])
    aH = jax.nn.sigmoid(H_H @ params["tilde_W_H"])
    aI = jax.nn.sigmoid(H_I @ params["tilde_W_I"])
    alpha = jax.nn.softmax(
        jnp.concatenate([aL, aH, aI], axis=1) / temperature @ params["W_Mix"],
        axis=1)
    H = alpha[:, 0:1] * H_L + alpha[:, 1:2] * H_H + alpha[:, 2:3] * H_I
    return jax.nn.relu(H)


def init_params(key, in_channels, out_channels):
    ks = jax.random.split(key, 7)
    return {
        "W_L": jax.random.normal(ks[0], (in_channels, out_channels), jnp.float32),
        "W_H": jax.random.normal(ks[1], (in_channels, out_channels), jnp.float32),
        "W_I": jax.random.normal(ks[2], (in_channels, out_channels), jnp.float32),
        "tilde_W_L": jax.random.normal(ks[3], (out_channels, 1), jnp.float32),
        "tilde_W_H": jax.random.normal(ks[4], (out_channels, 1), jnp.float32),
        "tilde_W_I": jax.random.normal(ks[5], (out_channels, 1), jnp.float32),
        "W_Mix": jax.random.normal(ks[6], (3, 3), jnp.float32),
    }


if __name__ == "__main__":
    N = 8            # number of graph nodes
    C_IN = 16        # in_channels
    C_OUT = 32       # out_channels

    key = jax.random.PRNGKey(0)
    k_x, k_a, k_p = jax.random.split(key, 3)

    X = jax.random.normal(k_x, (N, C_IN), jnp.float32)
    # Symmetric 0/1 adjacency (valid graph -> positive degrees after +I).
    A_upper = jax.random.bernoulli(k_a, 0.4, (N, N)).astype(jnp.float32)
    A = jnp.triu(A_upper, 1)
    A = A + A.T

    params = init_params(k_p, C_IN, C_OUT)

    def max_scaled_err(a, b):
        # per-element error scaled by (1 + |ref|): catches precision regressions
        return float(jnp.max(jnp.abs(a - b) / (1.0 + jnp.abs(b))))

    # Full-precision MXU path: tight check vs reference (both options).
    for opt in (1, 2):
        out = jax.block_until_ready(
            gnn_layer(X, A, params, temperature=1.0, option=opt,
                      mxu_dtype=jnp.float32))
        ref = gnn_layer_ref(X, A, params, temperature=1.0, option=opt)
        assert out.shape == (N, C_OUT)
        assert jnp.allclose(out, ref, rtol=5e-3, atol=5e-3), \
            f"f32 mismatch vs reference (option={opt})"

    # Default bf16-stream path, option 1.
    out1 = jax.block_until_ready(
        gnn_layer(X, A, params, temperature=1.0, option=1))
    ref1 = gnn_layer_ref(X, A, params, temperature=1.0, option=1)
    assert max_scaled_err(out1, ref1) < 0.1, \
        "bf16 option=1 error too large vs reference"

    # bf16, option 2, with the degree normalization precomputed outside the
    # layer (amortizes the extra read of A across stacked layers).
    d_precomp = 1.0 / jnp.sqrt(jnp.sum(A, axis=1) + 1.0)
    out2 = jax.block_until_ready(
        gnn_layer(X, A, params, d_inv_sqrt=d_precomp, temperature=1.0,
                  option=2))
    ref2 = gnn_layer_ref(X, A, params, temperature=1.0, option=2)
    assert max_scaled_err(out2, ref2) < 0.1, \
        "bf16 option=2 error too large vs reference"

    print("KERNEL_OK")
</pallas_src>

<mosaic_0001>
module attributes {stable_mosaic.version = 11 : i64} {
  func.func @_gnn_kernel_opt1(%arg0: i32, %arg1: memref<8x1xf32, #tpu.memory_space<vmem>>, %arg2: memref<8x128xf32, #tpu.memory_space<vmem>>, %arg3: memref<8x8xf32, #tpu.memory_space<vmem>>, %arg4: memref<8x128xf32, #tpu.memory_space<vmem>>, %arg5: memref<128x384xf32, #tpu.memory_space<vmem>>, %arg6: memref<3x128xf32, #tpu.memory_space<vmem>>, %arg7: memref<3x3xf32, #tpu.memory_space<smem>>, %arg8: memref<8x128xf32, #tpu.memory_space<vmem>>) attributes {dimension_semantics = [#tpu.dimension_semantics<parallel>], iteration_bounds = array<i64: 1>, scalar_prefetch = 0 : i64, scratch_operands = 0 : i64, tpu.core_type = #tpu.core_type<tc>, window_params = [{transform_indices = @transform_0, window_bounds = array<i64: 8, 1>}, {transform_indices = @transform_1, window_bounds = array<i64: 8, 128>}, {transform_indices = @transform_2, window_bounds = array<i64: 8, 8>}, {pipeline_mode = #tpu.pipeline_mode<synchronous>, transform_indices = @transform_3, window_bounds = array<i64: 8, 128>}, {pipeline_mode = #tpu.pipeline_mode<synchronous>, transform_indices = @transform_4, window_bounds = array<i64: 128, 384>}, {pipeline_mode = #tpu.pipeline_mode<synchronous>, transform_indices = @transform_5, window_bounds = array<i64: 3, 128>}, {transform_indices = @transform_6, window_bounds = array<i64: 3, 3>}, {transform_indices = @transform_7, window_bounds = array<i64: 8, 128>}]} {
    %c0 = arith.constant 0 : index
    %c0_0 = arith.constant 0 : index
    %0 = vector.load %arg1[%c0, %c0_0] : memref<8x1xf32, #tpu.memory_space<vmem>>, vector<8x1xf32>
    %c0_1 = arith.constant 0 : index
    %c0_2 = arith.constant 0 : index
    %1 = vector.load %arg2[%c0_1, %c0_2] : memref<8x128xf32, #tpu.memory_space<vmem>>, vector<8x128xf32>
    %c0_3 = arith.constant 0 : index
    %c0_4 = arith.constant 0 : index
    %2 = vector.load %arg3[%c0_3, %c0_4] : memref<8x8xf32, #tpu.memory_space<vmem>>, vector<8x8xf32>
    %c0_5 = arith.constant 0 : index
    %c0_6 = arith.constant 0 : index
    %3 = vector.load %arg4[%c0_5, %c0_6] : memref<8x128xf32, #tpu.memory_space<vmem>>, vector<8x128xf32>
    %cst = arith.constant dense<0.000000e+00> : vector<8x128xf32>
    %4 = tpu.matmul %2, %3, %cst {dimension_numbers = #tpu.dot_dimension_numbers<[1], [0], [0], [1], [0, 0, 1, 1], [], []>} : vector<8x8xf32>, vector<8x128xf32>, vector<8x128xf32> -> vector<8x128xf32>
    %5 = vector.broadcast %0 : vector<8x1xf32> to vector<8x128xf32>
    %6 = arith.mulf %5, %4 : vector<8x128xf32>
    %7 = arith.mulf %0, %0 : vector<8x1xf32>
    %8 = vector.broadcast %7 : vector<8x1xf32> to vector<8x128xf32>
    %9 = arith.mulf %8, %1 : vector<8x128xf32>
    %10 = arith.addf %6, %9 : vector<8x128xf32>
    %11 = arith.subf %1, %10 : vector<8x128xf32>
    %c0_7 = arith.constant 0 : index
    %c0_8 = arith.constant 0 : index
    %12 = vector.load %arg5[%c0_7, %c0_8] : memref<128x384xf32, #tpu.memory_space<vmem>>, vector<128x128xf32>
    %c0_9 = arith.constant 0 : index
    %c128 = arith.constant 128 : index
    %13 = vector.load %arg5[%c0_9, %c128] : memref<128x384xf32, #tpu.memory_space<vmem>>, vector<128x128xf32>
    %c0_10 = arith.constant 0 : index
    %c256 = arith.constant 256 : index
    %14 = vector.load %arg5[%c0_10, %c256] : memref<128x384xf32, #tpu.memory_space<vmem>>, vector<128x128xf32>
    %cst_11 = arith.constant dense<0.000000e+00> : vector<8x128xf32>
    %15 = tpu.matmul %10, %12, %cst_11 {dimension_numbers = #tpu.dot_dimension_numbers<[1], [0], [0], [1], [0, 0, 1, 1], [], []>} : vector<8x128xf32>, vector<128x128xf32>, vector<8x128xf32> -> vector<8x128xf32>
    %cst_12 = arith.constant 0.000000e+00 : f32
    %16 = vector.broadcast %cst_12 : f32 to vector<8x128xf32>
    %17 = arith.maximumf %15, %16 : vector<8x128xf32>
    %cst_13 = arith.constant dense<0.000000e+00> : vector<8x128xf32>
    %18 = tpu.matmul %11, %13, %cst_13 {dimension_numbers = #tpu.dot_dimension_numbers<[1], [0], [0], [1], [0, 0, 1, 1], [], []>} : vector<8x128xf32>, vector<128x128xf32>, vector<8x128xf32> -> vector<8x128xf32>
    %cst_14 = arith.constant 0.000000e+00 : f32
    %19 = vector.broadcast %cst_14 : f32 to vector<8x128xf32>
    %20 = arith.maximumf %18, %19 : vector<8x128xf32>
    %cst_15 = arith.constant dense<0.000000e+00> : vector<8x128xf32>
    %21 = tpu.matmul %1, %14, %cst_15 {dimension_numbers = #tpu.dot_dimension_numbers<[1], [0], [0], [1], [0, 0, 1, 1], [], []>} : vector<8x128xf32>, vector<128x128xf32>, vector<8x128xf32> -> vector<8x128xf32>
    %cst_16 = arith.constant 0.000000e+00 : f32
    %22 = vector.broadcast %cst_16 : f32 to vector<8x128xf32>
    %23 = arith.maximumf %21, %22 : vector<8x128xf32>
    %c0_17 = arith.constant 0 : index
    %c0_18 = arith.constant 0 : index
    %24 = vector.load %arg6[%c0_17, %c0_18] : memref<3x128xf32, #tpu.memory_space<vmem>>, vector<3x128xf32>
    %25 = vector.extract_strided_slice %24 {offsets = [0, 0], sizes = [1, 128], strides = [1, 1]} : vector<3x128xf32> to vector<1x128xf32>
    %26 = vector.broadcast %25 : vector<1x128xf32> to vector<8x128xf32>
    %27 = arith.mulf %17, %26 : vector<8x128xf32>
    %cst_19 = arith.constant dense<0.000000e+00> : vector<8xf32>
    %28 = vector.multi_reduction <add>, %27, %cst_19 [1] : vector<8x128xf32> to vector<8xf32>
    %29 = vector.shape_cast %28 : vector<8xf32> to vector<8x1xf32>
    %30 = arith.negf %29 : vector<8x1xf32>
    %31 = math.exp %30 : vector<8x1xf32>
    %cst_20 = arith.constant 1.000000e+00 : f32
    %32 = vector.broadcast %cst_20 : f32 to vector<8x1xf32>
    %33 = arith.addf %32, %31 : vector<8x1xf32>
    %34 = arith.divf %32, %33 : vector<8x1xf32>
    %cst_21 = arith.constant 1.000000e+00 : f32
    %35 = vector.broadcast %cst_21 : f32 to vector<8x1xf32>
    %36 = arith.mulf %34, %35 : vector<8x1xf32>
    %37 = vector.extract_strided_slice %24 {offsets = [1, 0], sizes = [1, 128], strides = [1, 1]} : vector<3x128xf32> to vector<1x128xf32>
    %38 = vector.broadcast %37 : vector<1x128xf32> to vector<8x128xf32>
    %39 = arith.mulf %20, %38 : vector<8x128xf32>
    %cst_22 = arith.constant dense<0.000000e+00> : vector<8xf32>
    %40 = vector.multi_reduction <add>, %39, %cst_22 [1] : vector<8x128xf32> to vector<8xf32>
    %41 = vector.shape_cast %40 : vector<8xf32> to vector<8x1xf32>
    %42 = arith.negf %41 : vector<8x1xf32>
    %43 = math.exp %42 : vector<8x1xf32>
    %cst_23 = arith.constant 1.000000e+00 : f32
    %44 = vector.broadcast %cst_23 : f32 to vector<8x1xf32>
    %45 = arith.addf %44, %43 : vector<8x1xf32>
    %46 = arith.divf %44, %45 : vector<8x1xf32>
    %cst_24 = arith.constant 1.000000e+00 : f32
    %47 = vector.broadcast %cst_24 : f32 to vector<8x1xf32>
    %48 = arith.mulf %46, %47 : vector<8x1xf32>
    %49 = vector.extract_strided_slice %24 {offsets = [2, 0], sizes = [1, 128], strides = [1, 1]} : vector<3x128xf32> to vector<1x128xf32>
    %50 = vector.broadcast %49 : vector<1x128xf32> to vector<8x128xf32>
    %51 = arith.mulf %23, %50 : vector<8x128xf32>
    %cst_25 = arith.constant dense<0.000000e+00> : vector<8xf32>
    %52 = vector.multi_reduction <add>, %51, %cst_25 [1] : vector<8x128xf32> to vector<8xf32>
    %53 = vector.shape_cast %52 : vector<8xf32> to vector<8x1xf32>
    %54 = arith.negf %53 : vector<8x1xf32>
    %55 = math.exp %54 : vector<8x1xf32>
    %cst_26 = arith.constant 1.000000e+00 : f32
    %56 = vector.broadcast %cst_26 : f32 to vector<8x1xf32>
    %57 = arith.addf %56, %55 : vector<8x1xf32>
    %58 = arith.divf %56, %57 : vector<8x1xf32>
    %cst_27 = arith.constant 1.000000e+00 : f32
    %59 = vector.broadcast %cst_27 : f32 to vector<8x1xf32>
    %60 = arith.mulf %58, %59 : vector<8x1xf32>
    %c0_28 = arith.constant 0 : index
    %c0_29 = arith.constant 0 : index
    %61 = memref.load %arg7[%c0_28, %c0_29] : memref<3x3xf32, #tpu.memory_space<smem>>
    %62 = vector.broadcast %61 : f32 to vector<8x1xf32>
    %63 = arith.mulf %36, %62 : vector<8x1xf32>
    %c1 = arith.constant 1 : index
    %c0_30 = arith.constant 0 : index
    %64 = memref.load %arg7[%c1, %c0_30] : memref<3x3xf32, #tpu.memory_space<smem>>
    %65 = vector.broadcast %64 : f32 to vector<8x1xf32>
    %66 = arith.mulf %48, %65 : vector<8x1xf32>
    %67 = arith.addf %63, %66 : vector<8x1xf32>
    %c2 = arith.constant 2 : index
    %c0_31 = arith.constant 0 : index
    %68 = memref.load %arg7[%c2, %c0_31] : memref<3x3xf32, #tpu.memory_space<smem>>
    %69 = vector.broadcast %68 : f32 to vector<8x1xf32>
    %70 = arith.mulf %60, %69 : vector<8x1xf32>
    %71 = arith.addf %67, %70 : vector<8x1xf32>
    %c0_32 = arith.constant 0 : index
    %c1_33 = arith.constant 1 : index
    %72 = memref.load %arg7[%c0_32, %c1_33] : memref<3x3xf32, #tpu.memory_space<smem>>
    %73 = vector.broadcast %72 : f32 to vector<8x1xf32>
    %74 = arith.mulf %36, %73 : vector<8x1xf32>
    %c1_34 = arith.constant 1 : index
    %c1_35 = arith.constant 1 : index
    %75 = memref.load %arg7[%c1_34, %c1_35] : memref<3x3xf32, #tpu.memory_space<smem>>
    %76 = vector.broadcast %75 : f32 to vector<8x1xf32>
    %77 = arith.mulf %48, %76 : vector<8x1xf32>
    %78 = arith.addf %74, %77 : vector<8x1xf32>
    %c2_36 = arith.constant 2 : index
    %c1_37 = arith.constant 1 : index
    %79 = memref.load %arg7[%c2_36, %c1_37] : memref<3x3xf32, #tpu.memory_space<smem>>
    %80 = vector.broadcast %79 : f32 to vector<8x1xf32>
    %81 = arith.mulf %60, %80 : vector<8x1xf32>
    %82 = arith.addf %78, %81 : vector<8x1xf32>
    %c0_38 = arith.constant 0 : index
    %c2_39 = arith.constant 2 : index
    %83 = memref.load %arg7[%c0_38, %c2_39] : memref<3x3xf32, #tpu.memory_space<smem>>
    %84 = vector.broadcast %83 : f32 to vector<8x1xf32>
    %85 = arith.mulf %36, %84 : vector<8x1xf32>
    %c1_40 = arith.constant 1 : index
    %c2_41 = arith.constant 2 : index
    %86 = memref.load %arg7[%c1_40, %c2_41] : memref<3x3xf32, #tpu.memory_space<smem>>
    %87 = vector.broadcast %86 : f32 to vector<8x1xf32>
    %88 = arith.mulf %48, %87 : vector<8x1xf32>
    %89 = arith.addf %85, %88 : vector<8x1xf32>
    %c2_42 = arith.constant 2 : index
    %c2_43 = arith.constant 2 : index
    %90 = memref.load %arg7[%c2_42, %c2_43] : memref<3x3xf32, #tpu.memory_space<smem>>
    %91 = vector.broadcast %90 : f32 to vector<8x1xf32>
    %92 = arith.mulf %60, %91 : vector<8x1xf32>
    %93 = arith.addf %89, %92 : vector<8x1xf32>
    %94 = arith.maximumf %71, %82 : vector<8x1xf32>
    %95 = arith.maximumf %94, %93 : vector<8x1xf32>
    %96 = arith.subf %71, %95 : vector<8x1xf32>
    %97 = math.exp %96 : vector<8x1xf32>
    %98 = arith.subf %82, %95 : vector<8x1xf32>
    %99 = math.exp %98 : vector<8x1xf32>
    %100 = arith.subf %93, %95 : vector<8x1xf32>
    %101 = math.exp %100 : vector<8x1xf32>
    %102 = arith.addf %97, %99 : vector<8x1xf32>
    %103 = arith.addf %102, %101 : vector<8x1xf32>
    %104 = tpu.reciprocal %103 {approx = true} : vector<8x1xf32> -> vector<8x1xf32>
    %105 = arith.mulf %97, %104 : vector<8x1xf32>
    %106 = vector.broadcast %105 : vector<8x1xf32> to vector<8x128xf32>
    %107 = arith.mulf %106, %17 : vector<8x128xf32>
    %108 = arith.mulf %99, %104 : vector<8x1xf32>
    %109 = vector.broadcast %108 : vector<8x1xf32> to vector<8x128xf32>
    %110 = arith.mulf %109, %20 : vector<8x128xf32>
    %111 = arith.addf %107, %110 : vector<8x128xf32>
    %112 = arith.mulf %101, %104 : vector<8x1xf32>
    %113 = vector.broadcast %112 : vector<8x1xf32> to vector<8x128xf32>
    %114 = arith.mulf %113, %23 : vector<8x128xf32>
    %115 = arith.addf %111, %114 : vector<8x128xf32>
    %cst_44 = arith.constant 0.000000e+00 : f32
    %116 = vector.broadcast %cst_44 : f32 to vector<8x128xf32>
    %117 = arith.maximumf %115, %116 : vector<8x128xf32>
    %c0_45 = arith.constant 0 : index
    %c0_46 = arith.constant 0 : index
    %118 = vector.load %arg8[%c0_45, %c0_46] : memref<8x128xf32, #tpu.memory_space<vmem>>, vector<8x128xf32>
    tpu.vector_store %arg8[%c0_45, %c0_46], %117 {strides = array<i32>} : memref<8x128xf32, #tpu.memory_space<vmem>>, vector<8x128xf32>,
    return
  }
  func.func @transform_0(%arg0: i32) -> (i32, i32) {
    %c0_i32 = arith.constant 0 : i32
    %c0_i32_0 = arith.constant 0 : i32
    return %arg0, %c0_i32 : i32, i32
  }
  func.func @transform_1(%arg0: i32) -> (i32, i32) {
    %c0_i32 = arith.constant 0 : i32
    %c0_i32_0 = arith.constant 0 : i32
    return %arg0, %c0_i32 : i32, i32
  }
  func.func @transform_2(%arg0: i32) -> (i32, i32) {
    %c0_i32 = arith.constant 0 : i32
    %c0_i32_0 = arith.constant 0 : i32
    return %arg0, %c0_i32 : i32, i32
  }
  func.func @transform_3(%arg0: i32) -> (i32, i32) {
    %c0_i32 = arith.constant 0 : i32
    %c0_i32_0 = arith.constant 0 : i32
    %c0_i32_1 = arith.constant 0 : i32
    return %c0_i32, %c0_i32_0 : i32, i32
  }
  func.func @transform_4(%arg0: i32) -> (i32, i32) {
    %c0_i32 = arith.constant 0 : i32
    %c0_i32_0 = arith.constant 0 : i32
    %c0_i32_1 = arith.constant 0 : i32
    return %c0_i32, %c0_i32_0 : i32, i32
  }
  func.func @transform_5(%arg0: i32) -> (i32, i32) {
    %c0_i32 = arith.constant 0 : i32
    %c0_i32_0 = arith.constant 0 : i32
    %c0_i32_1 = arith.constant 0 : i32
    return %c0_i32, %c0_i32_0 : i32, i32
  }
  func.func @transform_6(%arg0: i32) -> (i32, i32) {
    %c0_i32 = arith.constant 0 : i32
    %c0_i32_0 = arith.constant 0 : i32
    %c0_i32_1 = arith.constant 0 : i32
    return %c0_i32, %c0_i32_0 : i32, i32
  }
  func.func @transform_7(%arg0: i32) -> (i32, i32) {
    %c0_i32 = arith.constant 0 : i32
    %c0_i32_0 = arith.constant 0 : i32
    return %arg0, %c0_i32 : i32, i32
  }
}

module attributes {stable_mosaic.version = 11 : i64} {
  func.func @_degree_kernel(%arg0: i32, %arg1: memref<8x8xf32, #tpu.memory_space<vmem>>, %arg2: memref<8x1xf32, #tpu.memory_space<vmem>>) attributes {dimension_semantics = [#tpu.dimension_semantics<parallel>], iteration_bounds = array<i64: 1>, scalar_prefetch = 0 : i64, scratch_operands = 0 : i64, tpu.core_type = #tpu.core_type<tc>, window_params = [{transform_indices = @transform_0, window_bounds = array<i64: 8, 8>}, {transform_indices = @transform_1, window_bounds = array<i64: 8, 1>}]} {
    %c0 = arith.constant 0 : index
    %c0_0 = arith.constant 0 : index
    %0 = vector.load %arg1[%c0, %c0_0] : memref<8x8xf32, #tpu.memory_space<vmem>>, vector<8x8xf32>
    %cst = arith.constant dense<0.000000e+00> : vector<8xf32>
    %1 = vector.multi_reduction <add>, %0, %cst [1] : vector<8x8xf32> to vector<8xf32>
    %2 = vector.shape_cast %1 : vector<8xf32> to vector<8x1xf32>
    %cst_1 = arith.constant 1.000000e+00 : f32
    %3 = vector.broadcast %cst_1 : f32 to vector<8x1xf32>
    %4 = arith.addf %2, %3 : vector<8x1xf32>
    %5 = math.rsqrt %4 : vector<8x1xf32>
    %c0_2 = arith.constant 0 : index
    %c0_3 = arith.constant 0 : index
    %6 = vector.load %arg2[%c0_2, %c0_3] : memref<8x1xf32, #tpu.memory_space<vmem>>, vector<8x1xf32>
    tpu.vector_store %arg2[%c0_2, %c0_3], %5 {strides = array<i32>} : memref<8x1xf32, #tpu.memory_space<vmem>>, vector<8x1xf32>,
    return
  }
  func.func @transform_0(%arg0: i32) -> (i32, i32) {
    %c0_i32 = arith.constant 0 : i32
    %c0_i32_0 = arith.constant 0 : i32
    return %arg0, %c0_i32 : i32, i32
  }
  func.func @transform_1(%arg0: i32) -> (i32, i32) {
    %c0_i32 = arith.constant 0 : i32
    %c0_i32_0 = arith.constant 0 : i32
    return %arg0, %c0_i32 : i32, i32
  }
}

module attributes {stable_mosaic.version = 11 : i64} {
  func.func @_dx_kernel(%arg0: i32, %arg1: memref<8x1xf32, #tpu.memory_space<vmem>>, %arg2: memref<8x128xf32, #tpu.memory_space<vmem>>, %arg3: memref<8x128xf32, #tpu.memory_space<vmem>>) attributes {dimension_semantics = [#tpu.dimension_semantics<parallel>], iteration_bounds = array<i64: 1>, scalar_prefetch = 0 : i64, scratch_operands = 0 : i64, tpu.core_type = #tpu.core_type<tc>, window_params = [{transform_indices = @transform_0, window_bounds = array<i64: 8, 1>}, {transform_indices = @transform_1, window_bounds = array<i64: 8, 128>}, {transform_indices = @transform_2, window_bounds = array<i64: 8, 128>}]} {
    %c0 = arith.constant 0 : index
    %c0_0 = arith.constant 0 : index
    %0 = vector.load %arg1[%c0, %c0_0] : memref<8x1xf32, #tpu.memory_space<vmem>>, vector<8x1xf32>
    %c0_1 = arith.constant 0 : index
    %c0_2 = arith.constant 0 : index
    %1 = vector.load %arg2[%c0_1, %c0_2] : memref<8x128xf32, #tpu.memory_space<vmem>>, vector<8x128xf32>
    %2 = vector.broadcast %0 : vector<8x1xf32> to vector<8x128xf32>
    %3 = arith.mulf %2, %1 : vector<8x128xf32>
    %c0_3 = arith.constant 0 : index
    %c0_4 = arith.constant 0 : index
    %4 = vector.load %arg3[%c0_3, %c0_4] : memref<8x128xf32, #tpu.memory_space<vmem>>, vector<8x128xf32>
    tpu.vector_store %arg3[%c0_3, %c0_4], %3 {strides = array<i32>} : memref<8x128xf32, #tpu.memory_space<vmem>>, vector<8x128xf32>,
    return
  }
  func.func @transform_0(%arg0: i32) -> (i32, i32) {
    %c0_i32 = arith.constant 0 : i32
    %c0_i32_0 = arith.constant 0 : i32
    return %arg0, %c0_i32 : i32, i32
  }
  func.func @transform_1(%arg0: i32) -> (i32, i32) {
    %c0_i32 = arith.constant 0 : i32
    %c0_i32_0 = arith.constant 0 : i32
    return %arg0, %c0_i32 : i32, i32
  }
  func.func @transform_2(%arg0: i32) -> (i32, i32) {
    %c0_i32 = arith.constant 0 : i32
    %c0_i32_0 = arith.constant 0 : i32
    return %arg0, %c0_i32 : i32, i32
  }
}

</mosaic_0001>

<bundles_post_ra>
// kernel: gnn_layer.3
= control target key start
LH: loop header
LB: loop body
LE: loop exit
PB: predicated region body
PF: predicated region fallthrough
CT: control target
= control target key end

     0   :  { %vm9_vm0 = vcmask 64512   ;;  %vm24_vm3 = vcmask 7168   ;;  %s48_s0 = inlined_call_operand.vmem [shape: f32[8,8], index: 0, kind: input, shape index: {}]   ;;  %s49_s1 = inlined_call_operand.vmem [shape: f32[8,1], index: 1, kind: output, shape index: {}]  }
   0x1   :  { %v8_v0 = vld [vmem:[%s48_s0] sm:$0xff] }
   0x2   :  { %v10_v1 = vsel %vm9_vm0, %v8_v0, 0.0 }
   0x3   :  { %11 = vadd.xlane.f32.xlu0 %v10_v1 }
  0x76   :  { %v12_v2 = vpop.xlane.xlu0 %11 }
  0x77   :  { %v13_v3 = vadd.f32 1.0, %v12_v2 }
  0x79   :  { %30 = vrsqrt.f32 %v13_v3  ;;  %vm20_vm2 = vweird.f32 %v13_v3 }
  0x7f   :  { %v31_v4 = vpop.eup %30 }
  0x80   :  { %v15_v5 = vmul.f32 %v31_v4, %v13_v3  ;;  %vm21_vm1 = vweird.f32 %v31_v4 }
  0x81   :  { %vm22_vm4 = vmor %vm20_vm2, %vm21_vm1 }
  0x82   :  { %v16_v6 = vmul.f32 %v31_v4, %v15_v5 }
  0x84   :  { %v17_v7 = vmul.f32 0.5, %v16_v6 }
  0x86   :  { %v18_v8 = vsub.f32 1.5, %v17_v7 }
  0x88   :  { %v19_v9 = vmul.f32 %v31_v4, %v18_v8 }
  0x8a   :  { %v23_v10 = vsel %vm22_vm4, %v31_v4, %v19_v9 }
  0x8b   :  { %25 = vst.msk [vmem:[%s49_s1] sm:$0xff] %vm24_vm3, %v23_v10 }

// kernel: gnn_layer.4
= control target key start
LH: loop header
LB: loop body
LE: loop exit
PB: predicated region body
PF: predicated region fallthrough
CT: control target
= control target key end

     0   :  { %v26_v0 = vmov 0   ;;  %s51_s0 = inlined_call_operand.vmem [shape: f32[8,1], index: 0, kind: input, shape index: {}]   ;;  %s52_s1 = inlined_call_operand.vmem [shape: f32[8,128], index: 1, kind: input, shape index: {}]   ;;  %s53_s2 = inlined_call_operand.vmem [shape: f32[8,128], index: 2, kind: output, shape index: {}]  }
   0x1   :  { %25 = vset.pattern.permute.xlu0 %v26_v0  ;;  %v11_v1 = vld [vmem:[%s51_s0] sm:$0xff] }
   0x2   :  { %15 = vperm.xlu0 %25, %v11_v1   ;;  %v12_v2 = vld [vmem:[%s52_s1] sm:$0xff] }
  0x74   :  { %v16_v3 = vpop.permute.xlu0 %15 }
  0x75   :  { %v18_v4 = vmul.f32 %v16_v3, %v12_v2 }
  0x77   :  { %19 = vst [vmem:[%s53_s2] sm:$0xff] %v18_v4 }

// kernel: gnn_layer.5
= control target key start
LH: loop header
LB: loop body
LE: loop exit
PB: predicated region body
PF: predicated region fallthrough
CT: control target
= control target key end

     0   :  { %12 = vsyncpa [#allocation4], 0  ;;  %s682_s0 = inlined_call_operand.vmem [shape: f32[8,1], index: 0, kind: input, shape index: {}]   ;;  %s683_s1 = inlined_call_operand.vmem [shape: f32[8,128], index: 1, kind: input, shape index: {}]   ;;  %s684_s2 = inlined_call_operand.vmem [shape: f32[8,8], index: 2, kind: input, shape index: {}]   ;;  %s685_s3 = inlined_call_operand.vmem [shape: f32[8,128], index: 3, kind: input, shape index: {}]   ;;  %s686_s4 = inlined_call_operand.vmem [shape: f32[128,384], index: 4, kind: input, shape index: {}]   ;;  %s687_s5 = inlined_call_operand.vmem [shape: f32[3,128], index: 5, kind: input, shape index: {}]   ;;  %s688_s6 = inlined_call_operand.vmem [shape: f32[3,3], index: 6, kind: input, shape index: {}]   ;;  %s689_s7 = inlined_call_operand.hbm [shape: f32[8,128], index: 7, kind: output, shape index: {}]  }
   0x1   :  { %13 = vsyncpa [#allocation3], 0  ;;  %s31_s26 = sshll.u32 %s688_s6, 4  ;;  %s414_s27 = smov [#allocation2]   ;;  %s32_s26 = int_to_ptr.vmem [resolvable:$true] %s31_s26 }
   0x2   :  { %34 = dma.vmem_to_smem %s32_s26, 64, %s414_s27, [#allocation4]  }
   0x3   :  { %410 = dma.done.wait [#allocation4], 64  }
   0x4   :  { %411 = vsyncadd [#allocation4], 4294967232 }
   0x5   :  { %39 = sfence }
   0x6   :  { %v43_v0 = vld [vmem:[%s685_s3] sm:$0xff]  ;;  %vm44_vm0 = vcmask 64512   ;;  %v415_v3 = vmov 0   ;;  %v130_v4 = vld [vmem:[%s686_s4 + $0x178] sm:$0xff]  ;;  %v98_v6 = vld [vmem:[%s686_s4 + $0x168] sm:$0xff]  ;;  %s638_s25 = sld [smem:[#allocation2 + $0x2]] }
   0x7   :  { %v42_v1 = vld [vmem:[%s684_s2] sm:$0xff]  ;;  %353 = vset.pattern.permute.xlu0 %v415_v3  ;;  %63 = vmatpush.msra.mxu0 %v43_v0  ;;  %v97_v7 = vld [vmem:[%s686_s4 + $0x150] sm:$0xff]  ;;  %v128_v9 = vld [vmem:[%s686_s4 + $0x148] sm:$0xff]  ;;  %s640_s26 = sld [smem:[#allocation2 + $0x80]]  ;;  %s416_s9 = smov [#allocation5]  }
   0x8   :  { %v40_v2 = vld [vmem:[%s682_s0] sm:$0xff]  ;;  %338 = vmatmul.msk.f32.vlgmr.msra.gmra.mxu0 %vm44_vm0, %v42_v1  ;;  %173 = vmatpush.msra.mxu3 %v130_v4  ;;  %v114_v8 = vld [vmem:[%s686_s4 + $0x170] sm:$0xff]  ;;  %v96_v10 = vld [vmem:[%s686_s4 + $0x138] sm:$0xff]  ;;  %s642_s27 = sld [smem:[#allocation2 + $0x81]]  ;;  %s326_s10 = sshll.u32 %s416_s9, 4  ;;  %s327_s10 = int_to_ptr.vmem [resolvable:$true] %s326_s10 }
   0x9   :  { %70 = vperm.xlu0 %353, %v40_v2   ;;  %v129_v5 = vld [vmem:[%s686_s4 + $0x160] sm:$0xff]  ;;  %131 = vmatpush.msra.mxu1 %v98_v6  ;;  %v113_v11 = vld [vmem:[%s686_s4 + $0x158] sm:$0xff]  ;;  %v74_v13 = vmul.f32 %v40_v2, %v40_v2  ;;  %v127_v14 = vld [vmem:[%s686_s4 + $0x130] sm:$0xff]  ;;  %s644_s28 = sld [smem:[#allocation2 + $0x82]]  ;;  %s328_s12 = sshll.u32 %s689_s7, 4  ;;  %s329_s12 = int_to_ptr.hbm [resolvable:$true] %s328_s12 }
   0xa   :  { %152 = vmatpush.msra.mxu2 %v114_v8  ;;  %174 = vmatpush.msra.mxu3 %v129_v5  ;;  %v112_v12 = vld [vmem:[%s686_s4 + $0x140] sm:$0xff]  ;;  %v111_v16 = vld [vmem:[%s686_s4 + $0x128] sm:$0xff]  ;;  %v126_v17 = vld [vmem:[%s686_s4 + $0x118] sm:$0xff]  ;;  %s646_s29 = sld [smem:[#allocation2 + $0x100]] }
   0xb   :  { %132 = vmatpush.msra.mxu1 %v97_v7  ;;  %v95_v15 = vld [vmem:[%s686_s4 + $0x120] sm:$0xff]  ;;  %v94_v18 = vld [vmem:[%s686_s4 + $0x108] sm:$0xff]  ;;  %v110_v19 = vld [vmem:[%s686_s4 + $0x110] sm:$0xff]  ;;  %s648_s30 = sld [smem:[#allocation2 + $0x101]] }
   0xc   :  { %153 = vmatpush.msra.mxu2 %v113_v11  ;;  %175 = vmatpush.msra.mxu3 %v128_v9  ;;  %v125_v20 = vld [vmem:[%s686_s4 + $0x100] sm:$0xff]  ;;  %v93_v21 = vld [vmem:[%s686_s4 + $0xf0] sm:$0xff]  ;;  %v109_v22 = vld [vmem:[%s686_s4 + $0xf8] sm:$0xff]  ;;  %s661_s8 = sld [smem:[#allocation2 + $0x102]] }
   0xd   :  { %133 = vmatpush.msra.mxu1 %v96_v10  ;;  %v124_v23 = vld [vmem:[%s686_s4 + $0xe8] sm:$0xff]  ;;  %v92_v24 = vld [vmem:[%s686_s4 + $0xd8] sm:$0xff]  ;;  %v108_v25 = vld [vmem:[%s686_s4 + $0xe0] sm:$0xff] }
   0xe   :  { %154 = vmatpush.msra.mxu2 %v112_v12  ;;  %176 = vmatpush.msra.mxu3 %v127_v14  ;;  %v123_v26 = vld [vmem:[%s686_s4 + $0xd0] sm:$0xff]  ;;  %v91_v27 = vld [vmem:[%s686_s4 + $0xc0] sm:$0xff]  ;;  %v122_v28 = vld [vmem:[%s686_s4 + $0xb8] sm:$0xff] }
   0xf   :  { %134 = vmatpush.msra.mxu1 %v95_v15  ;;  %v121_v29 = vld [vmem:[%s686_s4 + $0xa0] sm:$0xff]  ;;  %v120_v30 = vld [vmem:[%s686_s4 + $0x88] sm:$0xff]  ;;  %v119_v31 = vld [vmem:[%s686_s4 + $0x70] sm:$0xff] }
  0x10   :  { %155 = vmatpush.msra.mxu2 %v111_v16  ;;  %177 = vmatpush.msra.mxu3 %v126_v17  ;;  %v118_v32 = vld [vmem:[%s686_s4 + $0x58] sm:$0xff]  ;;  %v90_v33 = vld [vmem:[%s686_s4 + $0xa8] sm:$0xff]  ;;  %v117_v35 = vld [vmem:[%s686_s4 + $0x40] sm:$0xff] }
  0x11   :  { %77 = vperm.xlu0 %353, %v74_v13   ;;  %135 = vmatpush.msra.mxu1 %v94_v18  ;;  %v107_v34 = vld [vmem:[%s686_s4 + $0xc8] sm:$0xff]  ;;  %v89_v36 = vld [vmem:[%s686_s4 + $0x90] sm:$0xff]  ;;  %v88_v39 = vld [vmem:[%s686_s4 + $0x78] sm:$0xff] }
  0x12   :  { %156 = vmatpush.msra.mxu2 %v110_v19  ;;  %178 = vmatpush.msra.mxu3 %v125_v20  ;;  %v106_v37 = vld [vmem:[%s686_s4 + $0xb0] sm:$0xff]  ;;  %v116_v38 = vld [vmem:[%s686_s4 + $0x28] sm:$0xff]  ;;  %v105_v40 = vld [vmem:[%s686_s4 + $0x98] sm:$0xff] }
  0x13   :  { %136 = vmatpush.msra.mxu1 %v93_v21  ;;  %v115_v41 = vld [vmem:[%s686_s4 + $0x10] sm:$0xff]  ;;  %v87_v42 = vld [vmem:[%s686_s4 + $0x60] sm:$0xff]  ;;  %v86_v45 = vld [vmem:[%s686_s4 + $0x48] sm:$0xff] }
  0x14   :  { %157 = vmatpush.msra.mxu2 %v109_v22  ;;  %179 = vmatpush.msra.mxu3 %v124_v23  ;;  %v104_v43 = vld [vmem:[%s686_s4 + $0x80] sm:$0xff]  ;;  %v103_v46 = vld [vmem:[%s686_s4 + $0x68] sm:$0xff]  ;;  %v85_v47 = vld [vmem:[%s686_s4 + $0x30] sm:$0xff] }
  0x15   :  { %137 = vmatpush.msra.mxu1 %v92_v24  ;;  %v41_v44 = vld [vmem:[%s683_s1] sm:$0xff]  ;;  %v102_v48 = vld [vmem:[%s686_s4 + $0x50] sm:$0xff]  ;;  %v84_v49 = vld [vmem:[%s686_s4 + $0x18] sm:$0xff] }
  0x16   :  { %158 = vmatpush.msra.mxu2 %v108_v25  ;;  %180 = vmatpush.msra.mxu3 %v123_v26  ;;  %v101_v50 = vld [vmem:[%s686_s4 + $0x38] sm:$0xff]  ;;  %v83_v51 = vld [vmem:[%s686_s4] sm:$0xff]  ;;  %v99_v53 = vld [vmem:[%s686_s4 + $0x8] sm:$0xff] }
  0x17   :  { %138 = vmatpush.msra.mxu1 %v91_v27  ;;  %v100_v52 = vld [vmem:[%s686_s4 + $0x20] sm:$0xff]  ;;  %s634_s4 = sld [smem:[#allocation2]] }
  0x18   :  { %181 = vmatpush.msra.mxu3 %v122_v28  ;;  %159 = vmatpush.msra.mxu2 %v107_v34  ;;  %v194_v61 = vld [vmem:[%s687_s5] sm:$0x7]  ;;  %s636_s5 = sld [smem:[#allocation2 + $0x1]] }
  0x19   :  { %139 = vmatpush.msra.mxu1 %v90_v33  ;;  %v241_v63 = vperm.slane %v194_v61, 2  ;;  %v195_v2 = vperm.slane %v194_v61, 0  ;;  %v218_v6 = vperm.slane %v194_v61, 1 }
  0x1a   :  { %182 = vmatpush.msra.mxu3 %v121_v29  ;;  %160 = vmatpush.msra.mxu2 %v106_v37 }
  0x1b   :  { %140 = vmatpush.msra.mxu1 %v89_v36 }
  0x1c   :  { %183 = vmatpush.msra.mxu3 %v120_v30  ;;  %161 = vmatpush.msra.mxu2 %v105_v40 }
  0x1d   :  { %141 = vmatpush.msra.mxu1 %v88_v39 }
  0x1e   :  { %184 = vmatpush.msra.mxu3 %v119_v31  ;;  %162 = vmatpush.msra.mxu2 %v104_v43 }
  0x1f   :  { %142 = vmatpush.msra.mxu1 %v87_v42  ;;  %v265_v42 = vstv %s634_s4 }
  0x20   :  { %185 = vmatpush.msra.mxu3 %v118_v32  ;;  %163 = vmatpush.msra.mxu2 %v103_v46 }
  0x21   :  { %143 = vmatpush.msra.mxu1 %v86_v45 }
  0x22   :  { %186 = vmatpush.msra.mxu3 %v117_v35  ;;  %164 = vmatpush.msra.mxu2 %v102_v48 }
  0x23   :  { %144 = vmatpush.msra.mxu1 %v85_v47 }
  0x24   :  { %187 = vmatpush.msra.mxu3 %v116_v38  ;;  %165 = vmatpush.msra.mxu2 %v101_v50  ;;  %v287_v50 = vstv %s638_s25 }
  0x25   :  { %145 = vmatpush.msra.mxu1 %v84_v49  ;;  %v276_v49 = vstv %s636_s5 }
  0x26   :  { %188 = vmatpush.msra.mxu3 %v115_v41  ;;  %166 = vmatpush.msra.mxu2 %v100_v52 }
  0x27   :  { %189 = vmatmul.f32.vlgmr.msra.gmra.mxu3 %v41_v44  ;;  %146 = vmatpush.msra.mxu1 %v83_v51 }
  0x28   :  { %167 = vmatpush.msra.mxu2 %v99_v53  ;;  %v268_v53 = vstv %s640_s26 }
  0x7b   :  { %v71_v54 = vpop.permute.xlu0 %70 }
  0x83   :  { %v78_v55 = vpop.permute.xlu0 %77 }
  0x84   :  { %v80_v57 = vmul.f32 %v78_v55, %v41_v44  ;;  %v290_v55 = vstv %s644_s28 }
  0x85   :  { %v65_v56 = vpop.f32.mrf.mxu0 }
  0x86   :  { %v73_v58 = vmul.f32 %v71_v54, %v65_v56  ;;  %v279_v54 = vstv %s642_s27 }
  0x88   :  { %v81_v59 = vadd.f32 %v80_v57, %v73_v58  ;;  %v272_v57 = vstv %s646_s29 }
  0x8a   :  { %147 = vmatmul.f32.vlgmr.msra.gmra.mxu1 %v81_v59  ;;  %v82_v60 = vsub.f32 %v41_v44, %v81_v59 }
  0x8c   :  { %168 = vmatmul.f32.vlgmr.msra.gmra.mxu2 %v82_v60  ;;  %v283_v60 = vstv %s648_s30 }
  0xaa   :  { %v619_v62 = vpop.f32.mrf.mxu3 }
  0xab   :  { %v193_v0 = vmax.f32 %v619_v62, 0.0 }
  0xad   :  { %v242_v1 = vmul.f32 %v241_v63, %v193_v0 }
  0xaf   :  { %243 = vadd.xlane.f32.xlu2 %v242_v1 }
 0x107   :  { %v624_v3 = vpop.f32.mrf.mxu1 }
 0x108   :  { %v151_v4 = vmax.f32 %v624_v3, 0.0 }
 0x10a   :  { %v196_v5 = vmul.f32 %v195_v2, %v151_v4 }
 0x10c   :  { %197 = vadd.xlane.f32.xlu1 %v196_v5 }
 0x10f   :  { %v629_v7 = vpop.f32.mrf.mxu2 }
 0x110   :  { %v172_v8 = vmax.f32 %v629_v7, 0.0 }
 0x112   :  { %v219_v9 = vmul.f32 %v218_v6, %v172_v8 }
 0x114   :  { %220 = vadd.xlane.f32.xlu1 %v219_v9 }
 0x122   :  { %v244_v10 = vpop.xlane.xlu2 %243 }
 0x123   :  { %v341_v11 = vmul.f32 -1.442695, %v244_v10 }
 0x125   :  { %354 = vpow2.f32 %v341_v11  ;;  %v294_v11 = vstv %s661_s8 }
 0x12b   :  { %v355_v12 = vpop.eup %354 }
 0x12c   :  { %v248_v15 = vadd.f32 1.0, %v355_v12 }
 0x12e   :  { %vm254_vm1 = vweird.f32 %v248_v15  ;;  %v260_v31 = vand.u32 2147483648, %v248_v15  ;;  %v258_v37 = vand.u32 2147483647, %v248_v15 }
 0x130   :  { %v261_v41 = vor.u32 1.1754944e-38, %v260_v31  ;;  %vm259_vm8 = vcmp.eq.f32.partialorder %v258_v37, 8.507059e+37 }
 0x17f   :  { %v198_v13 = vpop.xlane.xlu1 %197 }
 0x180   :  { %v339_v14 = vmul.f32 -1.442695, %v198_v13 }
 0x182   :  { %356 = vpow2.f32 %v339_v14 }
 0x183   :  { %358 = vrcp.f32 %v248_v15 }
 0x187   :  { %v221_v16 = vpop.xlane.xlu1 %220 }
 0x188   :  { %v357_v17 = vpop.eup %356  ;;  %v340_v18 = vmul.f32 -1.442695, %v221_v16 }
 0x189   :  { %v202_v19 = vadd.f32 1.0, %v357_v17  ;;  %v359_v20 = vpop.eup %358 }
 0x18a   :  { %360 = vpow2.f32 %v340_v18  ;;  %v250_v21 = vmul.f32 %v359_v20, %v248_v15  ;;  %vm255_vm2 = vweird.f32 %v359_v20 }
 0x18b   :  { %362 = vrcp.f32 %v202_v19  ;;  %v214_v33 = vand.u32 2147483648, %v202_v19  ;;  %vm650_vm4 = vmor %vm254_vm1, %vm255_vm2  ;;  %vm208_vm5 = vweird.f32 %v202_v19  ;;  %v212_v38 = vand.u32 2147483647, %v202_v19 }
 0x18c   :  { %v251_v26 = vsub.f32 1.0, %v250_v21 }
 0x18d   :  { %v215_v45 = vor.u32 1.1754944e-38, %v214_v33  ;;  %vm213_vm9 = vcmp.eq.f32.partialorder %v212_v38, 8.507059e+37 }
 0x18e   :  { %v252_v29 = vmul.f32 %v359_v20, %v251_v26 }
 0x190   :  { %v361_v22 = vpop.eup %360  ;;  %v253_v35 = vadd.f32 %v359_v20, %v252_v29 }
 0x191   :  { %v363_v23 = vpop.eup %362  ;;  %v225_v24 = vadd.f32 1.0, %v361_v22 }
 0x192   :  { %v204_v25 = vmul.f32 %v363_v23, %v202_v19  ;;  %vm209_vm3 = vweird.f32 %v363_v23  ;;  %v257_v48 = vsel %vm650_vm4, %v359_v20, %v253_v35 }
 0x193   :  { %364 = vrcp.f32 %v225_v24  ;;  %vm654_vm6 = vmor %vm208_vm5, %vm209_vm3  ;;  %v237_v44 = vand.u32 2147483648, %v225_v24  ;;  %v235_v47 = vand.u32 2147483647, %v225_v24  ;;  %vm231_vm10 = vweird.f32 %v225_v24 }
 0x194   :  { %v205_v27 = vsub.f32 1.0, %v204_v25  ;;  %v262_v58 = vsel %vm259_vm8, %v261_v41, %v257_v48 }
 0x195   :  { %v238_v56 = vor.u32 1.1754944e-38, %v237_v44  ;;  %vm236_vm12 = vcmp.eq.f32.partialorder %v235_v47, 8.507059e+37  ;;  %v273_v10 = vmul.f32 %v272_v57, %v262_v58  ;;  %v284_v12 = vmul.f32 %v283_v60, %v262_v58 }
 0x196   :  { %v206_v28 = vmul.f32 %v363_v23, %v205_v27  ;;  %v295_v18 = vmul.f32 %v294_v11, %v262_v58 }
 0x198   :  { %v207_v32 = vadd.f32 %v363_v23, %v206_v28 }
 0x199   :  { %v365_v30 = vpop.eup %364 }
 0x19a   :  { %v227_v34 = vmul.f32 %v365_v30, %v225_v24  ;;  %v211_v43 = vsel %vm654_vm6, %v363_v23, %v207_v32  ;;  %vm232_vm7 = vweird.f32 %v365_v30 }
 0x19b   :  { %v216_v51 = vsel %vm213_vm9, %v215_v45, %v211_v43  ;;  %vm233_vm11 = vmor %vm231_vm10, %vm232_vm7 }
 0x19c   :  { %v228_v40 = vsub.f32 1.0, %v227_v34  ;;  %v266_v61 = vmul.f32 %v265_v42, %v216_v51  ;;  %v277_v63 = vmul.f32 %v276_v49, %v216_v51  ;;  %v288_v2 = vmul.f32 %v287_v50, %v216_v51 }
 0x19e   :  { %v229_v46 = vmul.f32 %v365_v30, %v228_v40 }
 0x1a0   :  { %v230_v52 = vadd.f32 %v365_v30, %v229_v46 }
 0x1a2   :  { %v234_v59 = vsel %vm233_vm11, %v365_v30, %v230_v52 }
 0x1a3   :  { %v239_v1 = vsel %vm236_vm12, %v238_v56, %v234_v59 }
 0x1a4   :  { %v269_v5 = vmul.f32 %v268_v53, %v239_v1  ;;  %v280_v6 = vmul.f32 %v279_v54, %v239_v1  ;;  %v291_v9 = vmul.f32 %v290_v55, %v239_v1 }
 0x1a6   :  { %v270_v13 = vadd.f32 %v269_v5, %v266_v61  ;;  %v281_v14 = vadd.f32 %v280_v6, %v277_v63  ;;  %v292_v15 = vadd.f32 %v291_v9, %v288_v2 }
 0x1a8   :  { %v274_v16 = vadd.f32 %v273_v10, %v270_v13  ;;  %v285_v17 = vadd.f32 %v284_v12, %v281_v14  ;;  %v296_v19 = vadd.f32 %v295_v18, %v292_v15 }
 0x1aa   :  { %v297_v20 = vmax.f32 %v274_v16, %v285_v17 }
 0x1ac   :  { %v298_v21 = vmax.f32 %v297_v20, %v296_v19 }
 0x1ae   :  { %v299_v22 = vsub.f32 %v274_v16, %v298_v21  ;;  %v302_v23 = vsub.f32 %v285_v17, %v298_v21  ;;  %v305_v24 = vsub.f32 %v296_v19, %v298_v21 }
 0x1b0   :  { %v300_v25 = vmul.f32 1.442695, %v299_v22  ;;  %v303_v26 = vmul.f32 1.442695, %v302_v23  ;;  %v306_v27 = vmul.f32 1.442695, %v305_v24 }
 0x1b2   :  { %366 = vpow2.f32 %v300_v25 }
 0x1b3   :  { %368 = vpow2.f32 %v303_v26 }
 0x1b4   :  { %370 = vpow2.f32 %v306_v27 }
 0x1b8   :  { %v367_v28 = vpop.eup %366 }
 0x1b9   :  { %v369_v29 = vpop.eup %368 }
 0x1ba   :  { %v308_v30 = vadd.f32 %v369_v29, %v367_v28  ;;  %v371_v31 = vpop.eup %370 }
 0x1bc   :  { %v309_v32 = vadd.f32 %v371_v31, %v308_v30 }
 0x1be   :  { %372 = vrcp.f32 %v309_v32 }
 0x1c4   :  { %v373_v33 = vpop.eup %372 }
 0x1c5   :  { %v311_v34 = vmul.f32 %v373_v33, %v367_v28  ;;  %v313_v35 = vmul.f32 %v373_v33, %v369_v29  ;;  %v316_v36 = vmul.f32 %v373_v33, %v371_v31 }
 0x1c7   :  { %v312_v37 = vmul.f32 %v311_v34, %v151_v4  ;;  %v314_v38 = vmul.f32 %v313_v35, %v172_v8  ;;  %v317_v40 = vmul.f32 %v316_v36, %v193_v0 }
 0x1c9   :  { %v315_v39 = vadd.f32 %v314_v38, %v312_v37 }
 0x1cb   :  { %v318_v41 = vadd.f32 %v317_v40, %v315_v39 }
 0x1cd   :  { %v319_v42 = vmax.f32 %v318_v41, 0.0 }
 0x1cf   :  { %320 = vst [vmem:[#allocation5] sm:$0xff] %v319_v42 }
 0x1d0   :  { %331 = dma.vmem_to_hbm [thread:$0]  %s327_s10, 128, %s329_s12, [#allocation3]  }
 0x1d1   :  { %412 = dma.done.wait [#allocation3], 128  }
 0x1d2   :  { %413 = vsyncadd [#allocation3], 4294967168 }
 0x1d3   :  { %336 = vsyncpa [#allocation3], 1 }
 0x1d4   :  { %337 = vsyncpa [#allocation4], 1 }

</bundles_post_ra>
